<compile_context>
chip_gen: v6e
topology: v6e:2x2x1
jax: 0.10.0
libtpu: 0.0.40
codegen_flags: <defaults>
</compile_context>

<pallas_src>
import functools

import jax
import jax.numpy as jnp
from jax.experimental import pallas as pl
from jax.experimental.pallas import tpu as pltpu


@functools.lru_cache(maxsize=None)
def _roll_is_np_convention():
    """pltpu.roll is expected to follow np.roll semantics (out[i] = in[i-shift]).
    Verify once with a tiny probe kernel so a backend convention change cannot
    silently flip the convolution taps; the conv kernel adapts either way."""
    def k(x_ref, o_ref):
        # NOTE: axis must be non-negative in this JAX version.
        o_ref[...] = pltpu.roll(x_ref[...], shift=1, axis=1)

    x = jnp.arange(8 * 256, dtype=jnp.float32).reshape(8, 256)
    y = pl.pallas_call(k, out_shape=jax.ShapeDtypeStruct((8, 256), jnp.float32))(x)
    return bool(y[0, 1] == x[0, 0])


def _ibasic_block_kernel(x_ref, vec_ref, w1_ref, w2_ref, out_ref, *,
                         H, W, compute_dtype, roll_sign):
    """One image per grid step.
    x_ref block: (1, C, H*W) f32.  vec_ref: (C, 8) f32 packed per-channel
    vectors.  w*_ref: (C, 9*C) compute_dtype, taps stacked along contraction."""
    C = x_ref.shape[1]
    HW = H * W

    x = x_ref[0]                               # (C, HW) f32, identity branch

    s1 = vec_ref[:, 0:1]                       # bn1 folded scale
    b1 = vec_ref[:, 1:2]                       # bn1 folded bias
    b2 = vec_ref[:, 2:3]                       # bn2 bias (scale folded into w1)
    alpha = vec_ref[:, 3:4]                    # PReLU per-channel slope
    b3 = vec_ref[:, 4:5]                       # bn3 bias (scale folded into w2)

    # Per-tap zero-padding validity masks, built once at (1, HW) and shared by
    # both convs; jnp.where broadcasts them over the channel axis.
    pos = jax.lax.broadcasted_iota(jnp.int32, (1, HW), 1)
    col = pos % W
    row = pos // W
    col_ge1 = col >= 1            # x-1 in bounds
    col_le = col <= W - 2         # x+1 in bounds
    row_ge1 = row >= 1            # y-1 in bounds
    row_le = row <= H - 2         # y+1 in bounds
    taps_geom = []                # (dy, dx, mask-or-None), t = (dy+1)*3 + (dx+1)
    for dy in (-1, 0, 1):
        for dx in (-1, 0, 1):
            m = None
            if dy == -1:
                m = row_ge1
            elif dy == 1:
                m = row_le
            if dx == -1:
                m = col_ge1 if m is None else m & col_ge1
            elif dx == 1:
                m = col_le if m is None else m & col_le
            taps_geom.append((dy, dx, m))

    def conv3x3(h_f32, w_ref):
        # out[co, p] = sum_{t, ci} w[co, t*C + ci] * tap_t[ci, p]
        # Cast once to the MXU operand dtype; rolls (XLU) and border masks run
        # in that dtype; the 9 taps are stacked along the contraction axis so
        # the conv is a single (C, 9C) @ (9C, HW) matmul, f32 accumulation.
        hb = h_f32.astype(compute_dtype)
        taps = []
        for dy, dx, m in taps_geom:
            d = dy * W + dx
            if d == 0:
                s = hb
            else:
                s = pltpu.roll(hb, shift=(roll_sign * d) % HW, axis=hb.ndim - 1)
            if m is not None:
                s = jnp.where(m, s, 0.0)       # (1,HW) mask broadcast over C
            taps.append(s)
        sk = jnp.concatenate(taps, axis=0)     # (9*C, HW) compute_dtype
        return jnp.dot(w_ref[...], sk, preferred_element_type=jnp.float32)

    # ---- bn1 (folded scale/bias, elementwise FMA in f32) ----
    h = x * s1 + b1
    # ---- conv1 (3x3, stride 1, pad 1, no bias); bn2 scale folded into w1 ----
    h = conv3x3(h, w1_ref) + b2
    # ---- PReLU (per-channel alpha) ----
    h = jnp.where(h > 0, h, alpha * h)
    # ---- conv2 (3x3, stride 1, pad 1, no bias); bn3 scale folded into w2 ----
    h = conv3x3(h, w2_ref) + b3
    # ---- residual add (identity = pre-bn1 input) ----
    out_ref[0] = (h + x).astype(out_ref.dtype)


def ibasic_block(x, params, *, compute_dtype=jnp.bfloat16):
    """x: (N, C, H, W) float32 (PyTorch NCHW).  Returns (N, C, H, W) float32."""
    N, C, H, W = x.shape
    HW = H * W
    x2 = x.reshape(N, C, HW)        # NCHW -> (N, C, H*W): pure reshape, no copy

    s2 = params["bn2_scale"].reshape(C)
    s3 = params["bn3_scale"].reshape(C)

    def fold_and_stack(w9, s_out):
        # Fold the per-output-channel BN scale in f32, stack the 9 taps along
        # the contraction axis ((9,Co,Ci) -> (Co, 9*Ci)), then cast once to the
        # MXU operand dtype (halves weight DMA / VMEM vs f32).
        wf = w9 * s_out.reshape(1, C, 1)
        return jnp.transpose(wf, (1, 0, 2)).reshape(C, 9 * C).astype(compute_dtype)

    w1m = fold_and_stack(params["w1"], s2)
    w2m = fold_and_stack(params["w2"], s3)

    # Pack the remaining per-channel vectors into one (C, 8) f32 slab
    # (columns: bn1_scale, bn1_bias, bn2_bias, alpha, bn3_bias, pad, pad, pad).
    vecs = jnp.concatenate(
        [params["bn1_scale"], params["bn1_bias"], params["bn2_bias"],
         params["alpha"], params["bn3_bias"],
         jnp.zeros((C, 3), jnp.float32)], axis=1)

    roll_sign = -1 if _roll_is_np_convention() else 1

    img_spec = pl.BlockSpec((1, C, HW), lambda n: (n, 0, 0))   # lane-dense
    vec_spec = pl.BlockSpec((C, 8), lambda n: (0, 0))          # constant index
    w_spec = pl.BlockSpec((C, 9 * C), lambda n: (0, 0))        # constant index
    # TODO(synk): mark vec_spec/w_spec pipeline_mode=pl.Buffered(1) (grid-
    # invariant operands) once single-buffering of constant blocks is needed
    # for the v7x VMEM budget at production channel counts.

    out = pl.pallas_call(
        functools.partial(_ibasic_block_kernel, H=H, W=W,
                          compute_dtype=compute_dtype, roll_sign=roll_sign),
        out_shape=jax.ShapeDtypeStruct((N, C, HW), x.dtype),
        grid_spec=pltpu.PrefetchScalarGridSpec(
            num_scalar_prefetch=0,
            grid=(N,),                    # N >= 2 feeds both v7x TensorCores
            in_specs=[img_spec, vec_spec, w_spec, w_spec],
            out_specs=img_spec,
        ),
        compiler_params=pltpu.CompilerParams(
            dimension_semantics=("parallel",),
            vmem_limit_bytes=32 * 1024 * 1024,
        ),
    )(x2, vecs, w1m, w2m)
    return out.reshape(N, C, H, W)


def make_params(key, C):
    """Deterministic synthetic parameters.  BN (eval mode) folded to scale/bias."""
    ks = jax.random.split(key, 15)
    eps = 1e-5

    def folded_bn(k0, k1, k2, k3):
        gamma = 1.0 + 0.1 * jax.random.normal(k0, (C,), jnp.float32)
        beta = 0.1 * jax.random.normal(k1, (C,), jnp.float32)
        mean = 0.1 * jax.random.normal(k2, (C,), jnp.float32)
        var = jnp.abs(jax.random.normal(k3, (C,), jnp.float32)) + 0.5
        scale = gamma / jnp.sqrt(var + eps)
        bias = beta - mean * scale
        return scale.reshape(C, 1), bias.reshape(C, 1)

    bn1_s, bn1_b = folded_bn(*ks[0:4])
    bn2_s, bn2_b = folded_bn(*ks[4:8])
    bn3_s, bn3_b = folded_bn(*ks[8:12])
    # (9, Cout, Cin):  torch w[co, ci, ky, kx] -> w9[ky*3 + kx, co, ci]
    w1 = 0.1 * jax.random.normal(ks[12], (9, C, C), jnp.float32)
    w2 = 0.1 * jax.random.normal(ks[13], (9, C, C), jnp.float32)
    alpha = (0.25 + 0.05 * jax.random.normal(ks[14], (C,), jnp.float32)).reshape(C, 1)
    return dict(bn1_scale=bn1_s, bn1_bias=bn1_b, w1=w1,
                bn2_scale=bn2_s, bn2_bias=bn2_b, alpha=alpha,
                w2=w2, bn3_scale=bn3_s, bn3_bias=bn3_b)


def ref_block(x, p, *, conv_dtype=jnp.bfloat16, fold_scales=True):
    """Pure-JAX reference of IBasicBlock eval forward (NCHW).
    fold_scales=True mirrors the kernel's quantization (BN scales folded into
    the conv weights in f32 before the conv_dtype cast) for a tight comparison;
    fold_scales=False + conv_dtype=f32 is the literal module order."""
    C = x.shape[1]

    def cvec(v):
        return v.reshape(1, C, 1, 1)

    def conv(h, w9):
        w = jnp.transpose(w9.reshape(3, 3, C, C), (2, 3, 0, 1))  # -> OIHW
        return jax.lax.conv_general_dilated(
            h.astype(conv_dtype), w.astype(conv_dtype),
            window_strides=(1, 1), padding="SAME",
            dimension_numbers=("NCHW", "OIHW", "NCHW"),
            preferred_element_type=jnp.float32,
            precision=jax.lax.Precision.HIGHEST)

    w1, w2 = p["w1"], p["w2"]
    if fold_scales:
        w1 = w1 * p["bn2_scale"].reshape(1, C, 1)
        w2 = w2 * p["bn3_scale"].reshape(1, C, 1)

    h = x * cvec(p["bn1_scale"]) + cvec(p["bn1_bias"])
    h = conv(h, w1)
    if not fold_scales:
        h = h * cvec(p["bn2_scale"])
    h = h + cvec(p["bn2_bias"])
    h = jnp.where(h > 0, h, cvec(p["alpha"]) * h)
    h = conv(h, w2)
    if not fold_scales:
        h = h * cvec(p["bn3_scale"])
    h = h + cvec(p["bn3_bias"])
    return h + x


if __name__ == "__main__":
    # inplanes = planes = 16, stride = 1, H = W = 16 (H*W = 256 lanes), batch 2.
    # C = 16 keeps every 9-tap K-stack segment aligned to the bf16 (16, 128)
    # sublane tile.  NOTE: do not draw perf conclusions from this demo shape --
    # benchmark at C >= 64 (real iresnet layers) where the K-stacked matmul and
    # folded BN actually matter.
    N, C, H, W = 2, 16, 16, 16
    key = jax.random.PRNGKey(0)
    kx, kp = jax.random.split(key)
    x = jax.random.normal(kx, (N, C, H, W), jnp.float32)   # NCHW, like PyTorch
    params = make_params(kp, C)

    out = jax.block_until_ready(ibasic_block(x, params))
    assert out.shape == (N, C, H, W), out.shape

    # Tight gate: matched-quantization reference (same f32-folded -> bf16
    # weights, bf16 conv operands, f32 accumulation).  Differences are only
    # f32 summation-order effects plus rare one-ulp bf16 re-roundings of the
    # conv2 input.
    ref_m = ref_block(x, params, conv_dtype=jnp.bfloat16, fold_scales=True)
    err = jnp.abs(out - ref_m)
    mean_err = float(jnp.mean(err))
    max_err = float(jnp.max(err))
    assert mean_err < 1e-4, f"mean abs err too large vs matched ref: {mean_err}"
    assert max_err < 1e-2, f"max abs err too large vs matched ref: {max_err}"

    # Coarse gate: literal module order in f32 (no folding).  Tolerances absorb
    # bf16 conv quantization; this catches gross semantic mistakes (e.g. a BN
    # scale folded along the wrong channel axis) that the matched reference
    # would share.
    ref_f = ref_block(x, params, conv_dtype=jnp.float32, fold_scales=False)
    err32 = jnp.abs(out - ref_f)
    assert float(jnp.mean(err32)) < 3e-2, f"mean abs err vs f32 ref: {float(jnp.mean(err32))}"
    assert float(jnp.max(err32)) < 5e-1, f"max abs err vs f32 ref: {float(jnp.max(err32))}"

    print("KERNEL_OK")
</pallas_src>

<mosaic_0001>
module attributes {stable_mosaic.version = 11 : i64} {
  func.func @k(%arg0: memref<8x256xf32, #tpu.memory_space<vmem>>, %arg1: memref<8x256xf32, #tpu.memory_space<vmem>>) attributes {dimension_semantics = [], scalar_prefetch = 0 : i64, scratch_operands = 0 : i64, tpu.core_type = #tpu.core_type<tc>} {
    %c0 = arith.constant 0 : index
    %c0_0 = arith.constant 0 : index
    %0 = vector.load %arg0[%c0, %c0_0] : memref<8x256xf32, #tpu.memory_space<vmem>>, vector<8x256xf32>
    %c1_i32 = arith.constant 1 : i32
    %1 = tpu.dynamic_rotate %0 by %c1_i32 dim 1 : vector<8x256xf32>, i32 -> vector<8x256xf32>
    %c0_1 = arith.constant 0 : index
    %c0_2 = arith.constant 0 : index
    %2 = vector.load %arg1[%c0_1, %c0_2] : memref<8x256xf32, #tpu.memory_space<vmem>>, vector<8x256xf32>
    tpu.vector_store %arg1[%c0_1, %c0_2], %1 {strides = array<i32>} : memref<8x256xf32, #tpu.memory_space<vmem>>, vector<8x256xf32>,
    return
  }
}

</mosaic_0001>

<bundles_post_ra>
// kernel: tpu_custom_call.1
= control target key start
LH: loop header
LB: loop body
LE: loop exit
PB: predicated region body
PF: predicated region fallthrough
CT: control target
= control target key end

     0   :  { %6 = vsyncpa [#allocation3], 0  ;;  %s115_s0 = inlined_call_operand.hbm [shape: f32[8,256], index: 0, kind: input, shape index: {}]   ;;  %s116_s1 = inlined_call_operand.hbm [shape: f32[8,256], index: 1, kind: output, shape index: {}]  }
   0x1   :  { %7 = vsyncpa [#allocation4], 0  ;;  %s96_s6 = smov [#allocation2]  }
   0x2   :  { %s14_s7 = sshll.u32 %s96_s6, 4  ;;  %s15_s7 = int_to_ptr.vmem [resolvable:$true] %s14_s7 }
   0x3   :  { %s60_s8 = scalar_lea.vmem %s15_s7, 256  ;;  %p65_p1 = scmp.lt.s32.totalorder %s15_s7, %s15_s7 }
   0x4   :  { %p61_p0 = scmp.ne.s32.totalorder %s15_s7, %s60_s8  ;;  %p66_p2 = scmp.lt.s32.totalorder %s60_s8, %s60_s8 }
   0x6   :  { %p67_p3 = por %p66_p2, %p65_p1 }
   0x8   :  { %p68_p4 = pnand %p67_p3, %p61_p0 }
   0xa   :  { %71 = shalt.err (!%p68_p4)
}
   0xb   :  { %17 = dma.hbm_to_vmem [thread:$0]  %s115_s0, 256, %s15_s7, [#allocation3]  }
   0xc   :  { %92 = dma.done.wait [#allocation3], 256  }
   0xd   :  { %93 = vsyncadd [#allocation3], 4294967040  ;;  %v21_v0 = vld [vmem:[#allocation2] sm:$0xff]  ;;  %s97_s11 = smov 1   ;;  %v22_v1 = vld [vmem:[#allocation2 + $0x8] sm:$0xff]  ;;  %v27_v2 = vlaneseq  ;;  %s98_s12 = smov [#allocation5]  }
   0xe   :  { %23 = vrot.lane.b32.xlu0 %v21_v0, %s97_s11  ;;  %s40_s13 = sshll.u32 %s98_s12, 4  ;;  %s41_s13 = int_to_ptr.vmem [resolvable:$true] %s40_s13 }
   0xf   :  { %v28_v3 = vand.u32 127, %v27_v2  ;;  %s72_s0 = scalar_lea.vmem %s41_s13, 256  ;;  %p77_p6 = scmp.lt.s32.totalorder %s41_s13, %s41_s13 }
  0x10   :  { %p73_p5 = scmp.ne.s32.totalorder %s41_s13, %s72_s0  ;;  %p78_p7 = scmp.lt.s32.totalorder %s72_s0, %s72_s0 }
  0x11   :  { %vm29_vm0 = vcmp.lt.s32.totalorder %v28_v3, 1 }
  0x12   :  { %25 = vrot.lane.b32.xlu0 %v22_v1, %s97_s11  ;;  %p79_p8 = por %p78_p7, %p77_p6 }
  0x14   :  { %p80_p9 = pnand %p79_p8, %p73_p5 }
  0x80   :  { %v24_v4 = vpop.permute.xlu0 %23 }
  0x84   :  { %v26_v5 = vpop.permute.xlu0 %25 }
  0x85   :  { %v30_v6 = vsel %vm29_vm0, %v24_v4, %v26_v5  ;;  %v31_v7 = vsel %vm29_vm0, %v26_v5, %v24_v4 }
  0x86   :  { %32 = vst [vmem:[#allocation5] sm:$0xff] %v31_v7  ;;  %33 = vst [vmem:[#allocation5 + $0x8] sm:$0xff] %v30_v6 }
  0x87   :  { %83 = shalt.err (!%p80_p9)
}
  0x88   :  { %43 = dma.vmem_to_hbm [thread:$0]  %s41_s13, 256, %s116_s1, [#allocation4]  }
  0x89   :  { %94 = dma.done.wait [#allocation4], 256  }
  0x8a   :  { %95 = vsyncadd [#allocation4], 4294967040 }
  0x8b   :  { %47 = vsyncpa [#allocation3], 1 }
  0x8c   :  { %48 = vsyncpa [#allocation4], 1 }

</bundles_post_ra>
